<compile_context>
chip_gen: v7x
topology: tpu7x:2x2x1
jax: 0.10.0
libtpu: 0.0.40
codegen_flags: <defaults>
</compile_context>

<pallas_src>
import functools
import math

import jax
import jax.numpy as jnp
from jax.experimental import pallas as pl
from jax.experimental.pallas import tpu as pltpu

EPS = 1e-6
TAU = 0.1
R = 2            # `length` in StealLoss.__init__ (directional filter half-width)
NEG_PAD = -1e4   # exp(NEG_PAD / tau) == 0 exactly -> emulates conv2d zero padding
LANE = 128
SUB = 16         # sublane multiple for tile heights (bf16-mask friendly)


def _round_up(x, m):
    return ((x + m - 1) // m) * m


def _cdiv(a, b):
    return (a + b - 1) // b


# ---------------------------------------------------------------------------
# Pallas kernel: one row-tile grid step; loops over the batch internally with
# a manually double-buffered DMA of the prediction slab.
#   pred_hbm: (B, rows_total, WL) f32, HBM (pl.ANY), NEG_PAD padded
#   mask_ref: (4, TH, WL) bf16 per-section masks pre-summed over batch
#             order: horizontal, vertical, lead_diag, cnt_diag
#   out_ref:  (1, 1, 128) per-tile partial sum (lane-dense broadcast)
#   buf:      (2, THb, WL) f32 double-buffered prediction slab
#   sem:      (2,) DMA semaphores
#   ep_ref:   (THb, WL) f32 scratch for exp(pred/tau)
#   acc_ref:  (TH, WL) f32 per-element accumulator across the batch loop
# ---------------------------------------------------------------------------
def _steal_nms_kernel(pred_hbm, mask_ref, out_ref,
                      buf, sem, ep_ref, acc_ref,
                      *, tau, r, eps, tile_h, n_batch):
    TH = tile_h
    THb = ep_ref.shape[0]
    WL = ep_ref.shape[1]
    inv_tau = 1.0 / tau

    row0 = pl.multiple_of(pl.program_id(0) * TH, 8)

    def start_fetch(b, slot):
        pltpu.make_async_copy(
            pred_hbm.at[b, pl.ds(row0, THb), :],
            buf.at[slot],
            sem.at[slot],
        ).start()

    # Kick off the first prediction slab; overlap with the (batch-invariant)
    # mask_all computation from the auto-pipelined mask block.
    start_fetch(0, 0)

    mask_all = (mask_ref[0].astype(jnp.float32) +
                mask_ref[1].astype(jnp.float32) +
                mask_ref[2].astype(jnp.float32) +
                mask_ref[3].astype(jnp.float32))

    acc_ref[...] = jnp.zeros_like(acc_ref)

    def lane_roll(x, s):
        # pltpu.roll semantics: result[w] = x[(w - s) mod WL]; keep shift >= 0.
        s = s % WL
        return pltpu.roll(x, shift=s, axis=1) if s else x

    def band(dy):
        # rows of exp(pred/tau) shifted vertically by dy relative to the tile
        return ep_ref[pl.ds(r + dy, TH), :]

    @pl.loop(0, n_batch)
    def _(b):
        slot = b & 1
        # wait for this batch's slab; prefetch the next one into the other slot
        pltpu.make_async_copy(
            pred_hbm.at[b, pl.ds(row0, THb), :], buf.at[slot], sem.at[slot]
        ).wait()

        @pl.when(b + 1 < n_batch)
        def _():
            start_fetch(b + 1, 1 - slot)

        scaled = buf[slot] * inv_tau                 # (THb, WL) == pred / tau
        ep_ref[...] = jnp.exp(scaled)                # padding underflows to 0

        # log(ep/(ssum+eps)) = pred/tau - log(ssum+eps); pred/tau term is
        # shared by all four sections -> reduces against the mask sum.
        contrib = mask_all * scaled[r:r + TH, :]

        # -- horizontal: sum_dx ep[h, w+dx] ---------------------------------
        c = band(0)
        s_dir = c
        for d in range(1, r + 1):
            s_dir = s_dir + lane_roll(c, -d) + lane_roll(c, d)
        contrib = contrib - mask_ref[0].astype(jnp.float32) * jnp.log(s_dir + eps)

        # -- vertical: sum_dy ep[h+dy, w] -----------------------------------
        s_dir = band(-r)
        for dy in range(-r + 1, r + 1):
            s_dir = s_dir + band(dy)
        contrib = contrib - mask_ref[1].astype(jnp.float32) * jnp.log(s_dir + eps)

        # -- lead_diag (fliplr(eye)): sum_d ep[h+d, w-d] ---------------------
        s_dir = band(0)
        for d in range(1, r + 1):
            s_dir = s_dir + lane_roll(band(d), d) + lane_roll(band(-d), -d)
        contrib = contrib - mask_ref[2].astype(jnp.float32) * jnp.log(s_dir + eps)

        # -- cnt_diag (eye): sum_d ep[h+d, w+d] ------------------------------
        s_dir = band(0)
        for d in range(1, r + 1):
            s_dir = s_dir + lane_roll(band(d), -d) + lane_roll(band(-d), d)
        contrib = contrib - mask_ref[3].astype(jnp.float32) * jnp.log(s_dir + eps)

        acc_ref[...] += contrib

    # Single reduction per tile; lane-dense output, wrapper reads lane 0.
    out_ref[...] = jnp.sum(acc_ref[...]) * jnp.ones((1, 1, 128), jnp.float32)


# ---------------------------------------------------------------------------
# Plain-JAX glue: Kornia-equivalent angle computation on the labels
# (gaussian_blur2d(ksize=5, sigma=2, reflect) + spatial_gradient(sobel,
#  normalized, replicate)) and the section masks.
# ---------------------------------------------------------------------------
_SOBEL_X = jnp.array([[-1., 0., 1.],
                      [-2., 0., 2.],
                      [-1., 0., 1.]], jnp.float32) / 8.0
_SOBEL_Y = _SOBEL_X.T


def _correlate2d_valid(x, k):
    # x: (B, 1, h, w), k: (kh, kw). Cross-correlation (same as F.conv2d), VALID.
    return jax.lax.conv_general_dilated(
        x, k[None, None, :, :], window_strides=(1, 1), padding="VALID",
        dimension_numbers=("NCHW", "OIHW", "NCHW"))


def _gaussian_blur2d(x, ksize=5, sigma=2.0):
    ax = jnp.arange(ksize, dtype=jnp.float32) - (ksize - 1) / 2.0
    g = jnp.exp(-(ax ** 2) / (2.0 * sigma ** 2))
    g = g / jnp.sum(g)
    k2d = jnp.outer(g, g)
    p = ksize // 2
    xp = jnp.pad(x, ((0, 0), (0, 0), (p, p), (p, p)), mode="reflect")
    return _correlate2d_valid(xp, k2d)


def _spatial_gradient(x):
    xp = jnp.pad(x, ((0, 0), (0, 0), (1, 1), (1, 1)), mode="edge")
    return _correlate2d_valid(xp, _SOBEL_X), _correlate2d_valid(xp, _SOBEL_Y)


def get_normal_angles(image, eps=EPS):
    # image: (B, 1, H, W) -> angles (B, H, W)
    gx, gy = _spatial_gradient(_gaussian_blur2d(image))
    gxx, _ = _spatial_gradient(gx)        # d/dx of gx
    gxy, gyy = _spatial_gradient(gy)      # d/dx of gy, d/dy of gy
    angle = jnp.arctan(gyy * jnp.sign(-(gxy + eps)) / (gxx + eps))
    return angle[:, 0]


def _range_mask(angles, start, end):
    return (angles >= start) & (angles < end)


def get_mask_from_section(angles, section):
    pi = math.pi
    if section == "horizontal":
        m = _range_mask(angles, -pi / 8, pi / 8)
    elif section == "lead_diag":
        m = _range_mask(angles, pi / 8, 3 * pi / 8)
    elif section == "cnt_diag":
        m = _range_mask(angles, -3 * pi / 8, -pi / 8)
    elif section == "vertical":
        m = _range_mask(angles, 3 * pi / 8, pi / 2) | _range_mask(angles, -pi / 2, -3 * pi / 8)
    else:
        raise ValueError(section)
    return m.astype(jnp.float32)


# ---------------------------------------------------------------------------
# Generation-aware tiling
# ---------------------------------------------------------------------------
def _vmem_capacity_bytes():
    try:
        return int(pltpu.get_tpu_info().vmem_capacity_bytes)
    except Exception:
        return 64 * 1024 * 1024   # conservative (v7x-sized) default


def _pick_tiling(H, W, r, vmem_cap):
    WL = _round_up(W + r, LANE)            # lane-dense width, right pad >= r
    big_vmem = vmem_cap >= (100 << 20)     # v5e/v6e (128 MiB) vs v7x (64 MiB)
    vmem_limit = (64 << 20) if big_vmem else (38 << 20)
    want_th = 256 if big_vmem else 128
    # keep >= 2 row tiles whenever H allows so v7x's two cores both get work
    half_h = _round_up(max(_cdiv(H, 2), SUB), SUB)
    TH = max(SUB, min(_round_up(want_th, SUB), half_h))

    def vmem_need(th):
        thb = _round_up(th + 2 * r, 8)
        return (2 * thb * WL * 4          # pred double buffer (f32)
                + 2 * 4 * th * WL * 2     # mask double buffer (bf16)
                + thb * WL * 4            # exp scratch
                + th * WL * 4             # accumulator scratch
                + 10 * th * WL * 4)       # headroom for elementwise temporaries

    while TH > SUB and vmem_need(TH) > int(0.75 * vmem_limit):
        TH -= SUB
    return TH, WL, vmem_limit


# ---------------------------------------------------------------------------
# StealLoss forward
# ---------------------------------------------------------------------------
def steal_loss(predictions, labels, *, tau=TAU, r=R, tile_h=None):
    """predictions: (B, 1, H, W) float32; labels: (B, H, W) float32."""
    B, _, H, W = predictions.shape
    pred = predictions[:, 0].astype(jnp.float32)                      # (B, H, W)

    true_angles = get_normal_angles(labels[:, None, :, :].astype(jnp.float32))
    # NOTE: reference also computes pred_angles = get_normal_anlges(predictions)
    # but never uses it (dead code) -> skipped.
    # NOTE: exp(pred/tau) overflow behaviour matches the torch reference
    # (no per-neighborhood max subtraction).

    # Reference broadcasts log(norm) (B,1,H,W) against mask (B,H,W) -> (B,B,H,W)
    # and takes the mean over B*B*H*W; this factorizes into
    # (sum_b log_norm) * (sum_b mask), so pre-sum the masks over batch here.
    mask_sum = jnp.stack(
        [jnp.sum(get_mask_from_section(true_angles, s), axis=0)
         for s in ("horizontal", "vertical", "lead_diag", "cnt_diag")],
        axis=0)                                                        # (4, H, W)

    vmem_cap = _vmem_capacity_bytes()
    TH, WL, vmem_limit = _pick_tiling(H, W, r, vmem_cap)
    if tile_h is not None:
        TH = max(SUB, _round_up(min(tile_h, H), SUB))
    assert WL - W >= r, "right lane padding must cover the roll halo"

    NT = _cdiv(H, TH)
    H_pad = NT * TH
    THb = _round_up(TH + 2 * r, 8)         # 8-aligned DMA window height

    # Predictions padded with NEG_PAD (exp underflows to 0 == conv zero pad):
    # rows: r on top plus enough at the bottom that every THb-row DMA window
    # of every tile stays in bounds; cols: up to WL (>= W + r).
    rows_total = H_pad + (THb - TH)
    pred_p = jnp.pad(pred, ((0, 0), (r, rows_total - r - H), (0, WL - W)),
                     constant_values=NEG_PAD)                          # (B, rows_total, WL)

    # Masks: zero padding keeps the mean divisor at the original B*B*H*W;
    # batch counts <= B are exact in bf16 (halves mask HBM/VMEM traffic).
    mask_p = jnp.pad(mask_sum, ((0, 0), (0, H_pad - H), (0, WL - W))
                     ).astype(jnp.bfloat16)                            # (4, H_pad, WL)

    cost = pl.CostEstimate(
        flops=int(NT * B * TH * WL * 40),
        transcendentals=int(NT * B * (THb + 4 * TH) * WL),
        bytes_accessed=int(B * NT * THb * WL * 4 + mask_p.size * 2 + NT * 512),
    )

    kernel = functools.partial(_steal_nms_kernel, tau=tau, r=r, eps=EPS,
                               tile_h=TH, n_batch=B)

    partials = pl.pallas_call(
        kernel,
        out_shape=jax.ShapeDtypeStruct((NT, 1, 128), jnp.float32),
        grid=(NT,),
        in_specs=[
            pl.BlockSpec(memory_space=pl.ANY),                 # predictions stay in HBM
            pl.BlockSpec((4, TH, WL), lambda i: (0, i, 0)),    # bf16 masks, auto-pipelined
        ],
        out_specs=pl.BlockSpec((1, 1, 128), lambda i: (i, 0, 0)),
        scratch_shapes=[
            pltpu.VMEM((2, THb, WL), jnp.float32),   # double-buffered pred slab
            pltpu.SemaphoreType.DMA((2,)),
            pltpu.VMEM((THb, WL), jnp.float32),      # exp(pred/tau)
            pltpu.VMEM((TH, WL), jnp.float32),       # per-element accumulator
        ],
        compiler_params=pltpu.CompilerParams(
            dimension_semantics=("parallel",),
            vmem_limit_bytes=vmem_limit,
        ),
        cost_estimate=cost,
    )(pred_p, mask_p)

    total = jnp.sum(partials[:, 0, 0])
    loss = -total / (B * B * H * W)
    return {"loss_contour_nms": loss}


if __name__ == "__main__":
    key = jax.random.PRNGKey(0)
    k1, k2 = jax.random.split(key)
    B, H, W = 2, 16, 16

    predictions = jax.random.uniform(k1, (B, 1, H, W), jnp.float32)   # contour scores
    labels = (jax.random.uniform(k2, (B, H, W), jnp.float32) > 0.8).astype(jnp.float32)

    loss = steal_loss(predictions, labels)
    val = jax.block_until_ready(loss["loss_contour_nms"])
    assert bool(jnp.isfinite(val))
    print("KERNEL_OK")
</pallas_src>

<mosaic_0001>
module attributes {stable_mosaic.version = 11 : i64} {
  func.func @_steal_nms_kernel(%arg0: i32, %arg1: memref<2x24x128xf32, #tpu.memory_space<any>>, %arg2: memref<4x16x128xbf16, #tpu.memory_space<vmem>>, %arg3: memref<1x1x128xf32, #tpu.memory_space<vmem>>, %arg4: memref<2x24x128xf32, #tpu.memory_space<vmem>>, %arg5: memref<2x!tpu.dma_semaphore, #tpu.memory_space<semaphore_mem>>, %arg6: memref<24x128xf32, #tpu.memory_space<vmem>>, %arg7: memref<16x128xf32, #tpu.memory_space<vmem>>) attributes {dimension_semantics = [#tpu.dimension_semantics<parallel>], iteration_bounds = array<i64: 1>, scalar_prefetch = 0 : i64, scratch_operands = 4 : i64, tpu.core_type = #tpu.core_type<tc>, window_params = [{}, {transform_indices = @transform_1, window_bounds = array<i64: 4, 16, 128>}, {transform_indices = @transform_2, window_bounds = array<i64: 1, 1, 128>}]} {
    %c16_i32 = arith.constant 16 : i32
    %0 = arith.muli %arg0, %c16_i32 : i32
    %1 = tpu.assume_multiple %0, 8 : i32
    %c0_i32 = arith.constant 0 : i32
    %c0_i32_0 = arith.constant 0 : i32
    %c0_i32_1 = arith.constant 0 : i32
    %c0_i32_2 = arith.constant 0 : i32
    %2 = tpu.memref_slice %arg1[%c0_i32, %1, %c0_i32_2] : memref<2x24x128xf32, #tpu.memory_space<any>> -> memref<1x24x128xf32, #tpu.memory_space<any>>
    %3 = tpu.memref_squeeze %2 : memref<1x24x128xf32, #tpu.memory_space<any>> -> memref<24x128xf32, #tpu.memory_space<any>>
    %c0_i32_3 = arith.constant 0 : i32
    %c0_i32_4 = arith.constant 0 : i32
    %4 = tpu.memref_slice %arg4[%c0_i32_0, %c0_i32_3, %c0_i32_4] : memref<2x24x128xf32, #tpu.memory_space<vmem>> -> memref<1x24x128xf32, #tpu.memory_space<vmem>>
    %5 = tpu.memref_squeeze %4 : memref<1x24x128xf32, #tpu.memory_space<vmem>> -> memref<24x128xf32, #tpu.memory_space<vmem>>
    %6 = tpu.memref_slice %arg5[%c0_i32_1] : memref<2x!tpu.dma_semaphore, #tpu.memory_space<semaphore_mem>> -> memref<1x!tpu.dma_semaphore, #tpu.memory_space<semaphore_mem>>
    %7 = tpu.memref_squeeze %6 : memref<1x!tpu.dma_semaphore, #tpu.memory_space<semaphore_mem>> -> memref<!tpu.dma_semaphore, #tpu.memory_space<semaphore_mem>>
    tpu.enqueue_dma source(%3 : memref<24x128xf32, #tpu.memory_space<any>>) target(%5 : memref<24x128xf32, #tpu.memory_space<vmem>>) target_semaphore(%7 : memref<!tpu.dma_semaphore, #tpu.memory_space<semaphore_mem>>)
    %c0 = arith.constant 0 : index
    %c0_5 = arith.constant 0 : index
    %c0_6 = arith.constant 0 : index
    %8 = vector.load %arg2[%c0, %c0_5, %c0_6] : memref<4x16x128xbf16, #tpu.memory_space<vmem>>, vector<1x16x128xbf16>
    %9 = vector.shape_cast %8 : vector<1x16x128xbf16> to vector<16x128xbf16>
    %10 = arith.extf %9 : vector<16x128xbf16> to vector<16x128xf32>
    %c1 = arith.constant 1 : index
    %c0_7 = arith.constant 0 : index
    %c0_8 = arith.constant 0 : index
    %11 = vector.load %arg2[%c1, %c0_7, %c0_8] : memref<4x16x128xbf16, #tpu.memory_space<vmem>>, vector<1x16x128xbf16>
    %12 = vector.shape_cast %11 : vector<1x16x128xbf16> to vector<16x128xbf16>
    %13 = arith.extf %12 : vector<16x128xbf16> to vector<16x128xf32>
    %14 = arith.addf %10, %13 : vector<16x128xf32>
    %c2 = arith.constant 2 : index
    %c0_9 = arith.constant 0 : index
    %c0_10 = arith.constant 0 : index
    %15 = vector.load %arg2[%c2, %c0_9, %c0_10] : memref<4x16x128xbf16, #tpu.memory_space<vmem>>, vector<1x16x128xbf16>
    %16 = vector.shape_cast %15 : vector<1x16x128xbf16> to vector<16x128xbf16>
    %17 = arith.extf %16 : vector<16x128xbf16> to vector<16x128xf32>
    %18 = arith.addf %14, %17 : vector<16x128xf32>
    %c3 = arith.constant 3 : index
    %c0_11 = arith.constant 0 : index
    %c0_12 = arith.constant 0 : index
    %19 = vector.load %arg2[%c3, %c0_11, %c0_12] : memref<4x16x128xbf16, #tpu.memory_space<vmem>>, vector<1x16x128xbf16>
    %20 = vector.shape_cast %19 : vector<1x16x128xbf16> to vector<16x128xbf16>
    %21 = arith.extf %20 : vector<16x128xbf16> to vector<16x128xf32>
    %22 = arith.addf %18, %21 : vector<16x128xf32>
    %cst = arith.constant 0.000000e+00 : f32
    %23 = vector.broadcast %cst : f32 to vector<16x128xf32>
    %c0_13 = arith.constant 0 : index
    %c0_14 = arith.constant 0 : index
    %24 = vector.load %arg7[%c0_13, %c0_14] : memref<16x128xf32, #tpu.memory_space<vmem>>, vector<16x128xf32>
    tpu.vector_store %arg7[%c0_13, %c0_14], %23 {strides = array<i32>} : memref<16x128xf32, #tpu.memory_space<vmem>>, vector<16x128xf32>,
    %c0_i32_15 = arith.constant 0 : i32
    %c2_i32 = arith.constant 2 : i32
    %25 = arith.addi %c0_i32_15, %c2_i32 : i32
    %c1_i32 = arith.constant 1 : i32
    scf.for %arg8 = %c0_i32_15 to %25 step %c1_i32  : i32 {
      %c1_i32_24 = arith.constant 1 : i32
      %35 = arith.muli %arg8, %c1_i32_24 : i32
      %c0_i32_25 = arith.constant 0 : i32
      %36 = arith.addi %c0_i32_25, %35 : i32
      %c1_i32_26 = arith.constant 1 : i32
      %37 = arith.andi %36, %c1_i32_26 : i32
      %c0_i32_27 = arith.constant 0 : i32
      %38 = tpu.memref_slice %arg1[%36, %1, %c0_i32_27] : memref<2x24x128xf32, #tpu.memory_space<any>> -> memref<1x24x128xf32, #tpu.memory_space<any>>
      %39 = tpu.memref_squeeze %38 : memref<1x24x128xf32, #tpu.memory_space<any>> -> memref<24x128xf32, #tpu.memory_space<any>>
      %c0_i32_28 = arith.constant 0 : i32
      %c0_i32_29 = arith.constant 0 : i32
      %40 = tpu.memref_slice %arg4[%37, %c0_i32_28, %c0_i32_29] : memref<2x24x128xf32, #tpu.memory_space<vmem>> -> memref<1x24x128xf32, #tpu.memory_space<vmem>>
      %41 = tpu.memref_squeeze %40 : memref<1x24x128xf32, #tpu.memory_space<vmem>> -> memref<24x128xf32, #tpu.memory_space<vmem>>
      %42 = tpu.memref_slice %arg5[%37] : memref<2x!tpu.dma_semaphore, #tpu.memory_space<semaphore_mem>> -> memref<1x!tpu.dma_semaphore, #tpu.memory_space<semaphore_mem>>
      %43 = tpu.memref_squeeze %42 : memref<1x!tpu.dma_semaphore, #tpu.memory_space<semaphore_mem>> -> memref<!tpu.dma_semaphore, #tpu.memory_space<semaphore_mem>>
      tpu.wait_dma2 semaphore(%43 : memref<!tpu.dma_semaphore, #tpu.memory_space<semaphore_mem>>) src(%39 : memref<24x128xf32, #tpu.memory_space<any>>) dst(%41 : memref<24x128xf32, #tpu.memory_space<vmem>>)
      %c1_i32_30 = arith.constant 1 : i32
      %44 = arith.addi %36, %c1_i32_30 : i32
      %c2_i32_31 = arith.constant 2 : i32
      %45 = arith.cmpi slt, %44, %c2_i32_31 : i32
      %46 = arith.extui %45 : i1 to i32
      %c0_i32_32 = arith.constant 0 : i32
      %47 = arith.cmpi ne, %46, %c0_i32_32 : i32
      scf.if %47 {
        %c1_i32_99 = arith.constant 1 : i32
        %136 = arith.addi %36, %c1_i32_99 : i32
        %c1_i32_100 = arith.constant 1 : i32
        %137 = arith.subi %c1_i32_100, %37 : i32
        %c0_i32_101 = arith.constant 0 : i32
        %138 = tpu.memref_slice %arg1[%136, %1, %c0_i32_101] : memref<2x24x128xf32, #tpu.memory_space<any>> -> memref<1x24x128xf32, #tpu.memory_space<any>>
        %139 = tpu.memref_squeeze %138 : memref<1x24x128xf32, #tpu.memory_space<any>> -> memref<24x128xf32, #tpu.memory_space<any>>
        %c0_i32_102 = arith.constant 0 : i32
        %c0_i32_103 = arith.constant 0 : i32
        %140 = tpu.memref_slice %arg4[%137, %c0_i32_102, %c0_i32_103] : memref<2x24x128xf32, #tpu.memory_space<vmem>> -> memref<1x24x128xf32, #tpu.memory_space<vmem>>
        %141 = tpu.memref_squeeze %140 : memref<1x24x128xf32, #tpu.memory_space<vmem>> -> memref<24x128xf32, #tpu.memory_space<vmem>>
        %142 = tpu.memref_slice %arg5[%137] : memref<2x!tpu.dma_semaphore, #tpu.memory_space<semaphore_mem>> -> memref<1x!tpu.dma_semaphore, #tpu.memory_space<semaphore_mem>>
        %143 = tpu.memref_squeeze %142 : memref<1x!tpu.dma_semaphore, #tpu.memory_space<semaphore_mem>> -> memref<!tpu.dma_semaphore, #tpu.memory_space<semaphore_mem>>
        tpu.enqueue_dma source(%139 : memref<24x128xf32, #tpu.memory_space<any>>) target(%141 : memref<24x128xf32, #tpu.memory_space<vmem>>) target_semaphore(%143 : memref<!tpu.dma_semaphore, #tpu.memory_space<semaphore_mem>>)
      } else {
      }
      %48 = arith.index_cast %37 : i32 to index
      %c0_33 = arith.constant 0 : index
      %c0_34 = arith.constant 0 : index
      %49 = vector.load %arg4[%48, %c0_33, %c0_34] : memref<2x24x128xf32, #tpu.memory_space<vmem>>, vector<1x24x128xf32>
      %50 = vector.shape_cast %49 : vector<1x24x128xf32> to vector<24x128xf32>
      %cst_35 = arith.constant 1.000000e+01 : f32
      %51 = vector.broadcast %cst_35 : f32 to vector<24x128xf32>
      %52 = arith.mulf %50, %51 : vector<24x128xf32>
      %53 = math.exp %52 : vector<24x128xf32>
      %c0_36 = arith.constant 0 : index
      %c0_37 = arith.constant 0 : index
      %54 = vector.load %arg6[%c0_36, %c0_37] : memref<24x128xf32, #tpu.memory_space<vmem>>, vector<24x128xf32>
      tpu.vector_store %arg6[%c0_36, %c0_37], %53 {strides = array<i32>} : memref<24x128xf32, #tpu.memory_space<vmem>>, vector<24x128xf32>,
      %55 = vector.extract_strided_slice %52 {offsets = [2, 0], sizes = [16, 128], strides = [1, 1]} : vector<24x128xf32> to vector<16x128xf32>
      %56 = arith.mulf %22, %55 : vector<16x128xf32>
      %c2_38 = arith.constant 2 : index
      %c0_39 = arith.constant 0 : index
      %57 = vector.load %arg6[%c2_38, %c0_39] : memref<24x128xf32, #tpu.memory_space<vmem>>, vector<16x128xf32>
      %c127_i32 = arith.constant 127 : i32
      %58 = tpu.dynamic_rotate %57 by %c127_i32 dim 1 : vector<16x128xf32>, i32 -> vector<16x128xf32>
      %59 = arith.addf %57, %58 : vector<16x128xf32>
      %c1_i32_40 = arith.constant 1 : i32
      %60 = tpu.dynamic_rotate %57 by %c1_i32_40 dim 1 : vector<16x128xf32>, i32 -> vector<16x128xf32>
      %61 = arith.addf %59, %60 : vector<16x128xf32>
      %c126_i32 = arith.constant 126 : i32
      %62 = tpu.dynamic_rotate %57 by %c126_i32 dim 1 : vector<16x128xf32>, i32 -> vector<16x128xf32>
      %63 = arith.addf %61, %62 : vector<16x128xf32>
      %c2_i32_41 = arith.constant 2 : i32
      %64 = tpu.dynamic_rotate %57 by %c2_i32_41 dim 1 : vector<16x128xf32>, i32 -> vector<16x128xf32>
      %65 = arith.addf %63, %64 : vector<16x128xf32>
      %c0_42 = arith.constant 0 : index
      %c0_43 = arith.constant 0 : index
      %c0_44 = arith.constant 0 : index
      %66 = vector.load %arg2[%c0_42, %c0_43, %c0_44] : memref<4x16x128xbf16, #tpu.memory_space<vmem>>, vector<1x16x128xbf16>
      %67 = vector.shape_cast %66 : vector<1x16x128xbf16> to vector<16x128xbf16>
      %68 = arith.extf %67 : vector<16x128xbf16> to vector<16x128xf32>
      %cst_45 = arith.constant 9.99999997E-7 : f32
      %69 = vector.broadcast %cst_45 : f32 to vector<16x128xf32>
      %70 = arith.addf %65, %69 : vector<16x128xf32>
      %71 = math.log %70 : vector<16x128xf32>
      %72 = arith.mulf %68, %71 : vector<16x128xf32>
      %73 = arith.subf %56, %72 : vector<16x128xf32>
      %c0_46 = arith.constant 0 : index
      %c0_47 = arith.constant 0 : index
      %74 = vector.load %arg6[%c0_46, %c0_47] : memref<24x128xf32, #tpu.memory_space<vmem>>, vector<16x128xf32>
      %c1_48 = arith.constant 1 : index
      %c0_49 = arith.constant 0 : index
      %75 = vector.load %arg6[%c1_48, %c0_49] : memref<24x128xf32, #tpu.memory_space<vmem>>, vector<16x128xf32>
      %76 = arith.addf %74, %75 : vector<16x128xf32>
      %c2_50 = arith.constant 2 : index
      %c0_51 = arith.constant 0 : index
      %77 = vector.load %arg6[%c2_50, %c0_51] : memref<24x128xf32, #tpu.memory_space<vmem>>, vector<16x128xf32>
      %78 = arith.addf %76, %77 : vector<16x128xf32>
      %c3_52 = arith.constant 3 : index
      %c0_53 = arith.constant 0 : index
      %79 = vector.load %arg6[%c3_52, %c0_53] : memref<24x128xf32, #tpu.memory_space<vmem>>, vector<16x128xf32>
      %80 = arith.addf %78, %79 : vector<16x128xf32>
      %c4 = arith.constant 4 : index
      %c0_54 = arith.constant 0 : index
      %81 = vector.load %arg6[%c4, %c0_54] : memref<24x128xf32, #tpu.memory_space<vmem>>, vector<16x128xf32>
      %82 = arith.addf %80, %81 : vector<16x128xf32>
      %c1_55 = arith.constant 1 : index
      %c0_56 = arith.constant 0 : index
      %c0_57 = arith.constant 0 : index
      %83 = vector.load %arg2[%c1_55, %c0_56, %c0_57] : memref<4x16x128xbf16, #tpu.memory_space<vmem>>, vector<1x16x128xbf16>
      %84 = vector.shape_cast %83 : vector<1x16x128xbf16> to vector<16x128xbf16>
      %85 = arith.extf %84 : vector<16x128xbf16> to vector<16x128xf32>
      %cst_58 = arith.constant 9.99999997E-7 : f32
      %86 = vector.broadcast %cst_58 : f32 to vector<16x128xf32>
      %87 = arith.addf %82, %86 : vector<16x128xf32>
      %88 = math.log %87 : vector<16x128xf32>
      %89 = arith.mulf %85, %88 : vector<16x128xf32>
      %90 = arith.subf %73, %89 : vector<16x128xf32>
      %c2_59 = arith.constant 2 : index
      %c0_60 = arith.constant 0 : index
      %91 = vector.load %arg6[%c2_59, %c0_60] : memref<24x128xf32, #tpu.memory_space<vmem>>, vector<16x128xf32>
      %c3_61 = arith.constant 3 : index
      %c0_62 = arith.constant 0 : index
      %92 = vector.load %arg6[%c3_61, %c0_62] : memref<24x128xf32, #tpu.memory_space<vmem>>, vector<16x128xf32>
      %c1_i32_63 = arith.constant 1 : i32
      %93 = tpu.dynamic_rotate %92 by %c1_i32_63 dim 1 : vector<16x128xf32>, i32 -> vector<16x128xf32>
      %94 = arith.addf %91, %93 : vector<16x128xf32>
      %c1_64 = arith.constant 1 : index
      %c0_65 = arith.constant 0 : index
      %95 = vector.load %arg6[%c1_64, %c0_65] : memref<24x128xf32, #tpu.memory_space<vmem>>, vector<16x128xf32>
      %c127_i32_66 = arith.constant 127 : i32
      %96 = tpu.dynamic_rotate %95 by %c127_i32_66 dim 1 : vector<16x128xf32>, i32 -> vector<16x128xf32>
      %97 = arith.addf %94, %96 : vector<16x128xf32>
      %c4_67 = arith.constant 4 : index
      %c0_68 = arith.constant 0 : index
      %98 = vector.load %arg6[%c4_67, %c0_68] : memref<24x128xf32, #tpu.memory_space<vmem>>, vector<16x128xf32>
      %c2_i32_69 = arith.constant 2 : i32
      %99 = tpu.dynamic_rotate %98 by %c2_i32_69 dim 1 : vector<16x128xf32>, i32 -> vector<16x128xf32>
      %100 = arith.addf %97, %99 : vector<16x128xf32>
      %c0_70 = arith.constant 0 : index
      %c0_71 = arith.constant 0 : index
      %101 = vector.load %arg6[%c0_70, %c0_71] : memref<24x128xf32, #tpu.memory_space<vmem>>, vector<16x128xf32>
      %c126_i32_72 = arith.constant 126 : i32
      %102 = tpu.dynamic_rotate %101 by %c126_i32_72 dim 1 : vector<16x128xf32>, i32 -> vector<16x128xf32>
      %103 = arith.addf %100, %102 : vector<16x128xf32>
      %c2_73 = arith.constant 2 : index
      %c0_74 = arith.constant 0 : index
      %c0_75 = arith.constant 0 : index
      %104 = vector.load %arg2[%c2_73, %c0_74, %c0_75] : memref<4x16x128xbf16, #tpu.memory_space<vmem>>, vector<1x16x128xbf16>
      %105 = vector.shape_cast %104 : vector<1x16x128xbf16> to vector<16x128xbf16>
      %106 = arith.extf %105 : vector<16x128xbf16> to vector<16x128xf32>
      %cst_76 = arith.constant 9.99999997E-7 : f32
      %107 = vector.broadcast %cst_76 : f32 to vector<16x128xf32>
      %108 = arith.addf %103, %107 : vector<16x128xf32>
      %109 = math.log %108 : vector<16x128xf32>
      %110 = arith.mulf %106, %109 : vector<16x128xf32>
      %111 = arith.subf %90, %110 : vector<16x128xf32>
      %c2_77 = arith.constant 2 : index
      %c0_78 = arith.constant 0 : index
      %112 = vector.load %arg6[%c2_77, %c0_78] : memref<24x128xf32, #tpu.memory_space<vmem>>, vector<16x128xf32>
      %c3_79 = arith.constant 3 : index
      %c0_80 = arith.constant 0 : index
      %113 = vector.load %arg6[%c3_79, %c0_80] : memref<24x128xf32, #tpu.memory_space<vmem>>, vector<16x128xf32>
      %c127_i32_81 = arith.constant 127 : i32
      %114 = tpu.dynamic_rotate %113 by %c127_i32_81 dim 1 : vector<16x128xf32>, i32 -> vector<16x128xf32>
      %115 = arith.addf %112, %114 : vector<16x128xf32>
      %c1_82 = arith.constant 1 : index
      %c0_83 = arith.constant 0 : index
      %116 = vector.load %arg6[%c1_82, %c0_83] : memref<24x128xf32, #tpu.memory_space<vmem>>, vector<16x128xf32>
      %c1_i32_84 = arith.constant 1 : i32
      %117 = tpu.dynamic_rotate %116 by %c1_i32_84 dim 1 : vector<16x128xf32>, i32 -> vector<16x128xf32>
      %118 = arith.addf %115, %117 : vector<16x128xf32>
      %c4_85 = arith.constant 4 : index
      %c0_86 = arith.constant 0 : index
      %119 = vector.load %arg6[%c4_85, %c0_86] : memref<24x128xf32, #tpu.memory_space<vmem>>, vector<16x128xf32>
      %c126_i32_87 = arith.constant 126 : i32
      %120 = tpu.dynamic_rotate %119 by %c126_i32_87 dim 1 : vector<16x128xf32>, i32 -> vector<16x128xf32>
      %121 = arith.addf %118, %120 : vector<16x128xf32>
      %c0_88 = arith.constant 0 : index
      %c0_89 = arith.constant 0 : index
      %122 = vector.load %arg6[%c0_88, %c0_89] : memref<24x128xf32, #tpu.memory_space<vmem>>, vector<16x128xf32>
      %c2_i32_90 = arith.constant 2 : i32
      %123 = tpu.dynamic_rotate %122 by %c2_i32_90 dim 1 : vector<16x128xf32>, i32 -> vector<16x128xf32>
      %124 = arith.addf %121, %123 : vector<16x128xf32>
      %c3_91 = arith.constant 3 : index
      %c0_92 = arith.constant 0 : index
      %c0_93 = arith.constant 0 : index
      %125 = vector.load %arg2[%c3_91, %c0_92, %c0_93] : memref<4x16x128xbf16, #tpu.memory_space<vmem>>, vector<1x16x128xbf16>
      %126 = vector.shape_cast %125 : vector<1x16x128xbf16> to vector<16x128xbf16>
      %127 = arith.extf %126 : vector<16x128xbf16> to vector<16x128xf32>
      %cst_94 = arith.constant 9.99999997E-7 : f32
      %128 = vector.broadcast %cst_94 : f32 to vector<16x128xf32>
      %129 = arith.addf %124, %128 : vector<16x128xf32>
      %130 = math.log %129 : vector<16x128xf32>
      %131 = arith.mulf %127, %130 : vector<16x128xf32>
      %132 = arith.subf %111, %131 : vector<16x128xf32>
      %c0_95 = arith.constant 0 : index
      %c0_96 = arith.constant 0 : index
      %133 = vector.load %arg7[%c0_95, %c0_96] : memref<16x128xf32, #tpu.memory_space<vmem>>, vector<16x128xf32>
      %134 = arith.addf %133, %132 : vector<16x128xf32>
      %c0_97 = arith.constant 0 : index
      %c0_98 = arith.constant 0 : index
      %135 = vector.load %arg7[%c0_97, %c0_98] : memref<16x128xf32, #tpu.memory_space<vmem>>, vector<16x128xf32>
      tpu.vector_store %arg7[%c0_97, %c0_98], %134 {strides = array<i32>} : memref<16x128xf32, #tpu.memory_space<vmem>>, vector<16x128xf32>,
    }
    %c2_i32_16 = arith.constant 2 : i32
    %c0_17 = arith.constant 0 : index
    %c0_18 = arith.constant 0 : index
    %26 = vector.load %arg7[%c0_17, %c0_18] : memref<16x128xf32, #tpu.memory_space<vmem>>, vector<16x128xf32>
    %27 = vector.shape_cast %26 : vector<16x128xf32> to vector<1x16x128xf32>
    %cst_19 = arith.constant dense<0.000000e+00> : vector<1xf32>
    %28 = vector.multi_reduction <add>, %27, %cst_19 [1, 2] : vector<1x16x128xf32> to vector<1xf32>
    %29 = vector.shape_cast %28 : vector<1xf32> to vector<1x1x1xf32>
    %30 = vector.extract %29[0, 0, 0] : f32 from vector<1x1x1xf32>
    %cst_20 = arith.constant 1.000000e+00 : f32
    %31 = vector.broadcast %cst_20 : f32 to vector<1x1x128xf32>
    %32 = vector.broadcast %30 : f32 to vector<1x1x128xf32>
    %33 = arith.mulf %32, %31 : vector<1x1x128xf32>
    %c0_21 = arith.constant 0 : index
    %c0_22 = arith.constant 0 : index
    %c0_23 = arith.constant 0 : index
    %34 = vector.load %arg3[%c0_21, %c0_22, %c0_23] : memref<1x1x128xf32, #tpu.memory_space<vmem>>, vector<1x1x128xf32>
    tpu.vector_store %arg3[%c0_21, %c0_22, %c0_23], %33 {strides = array<i32>} : memref<1x1x128xf32, #tpu.memory_space<vmem>>, vector<1x1x128xf32>,
    return
  }
  func.func @transform_1(%arg0: i32) -> (i32, i32, i32) {
    %c0_i32 = arith.constant 0 : i32
    %c0_i32_0 = arith.constant 0 : i32
    %c0_i32_1 = arith.constant 0 : i32
    return %c0_i32, %arg0, %c0_i32_0 : i32, i32, i32
  }
  func.func @transform_2(%arg0: i32) -> (i32, i32, i32) {
    %c0_i32 = arith.constant 0 : i32
    %c0_i32_0 = arith.constant 0 : i32
    %c0_i32_1 = arith.constant 0 : i32
    return %arg0, %c0_i32, %c0_i32_0 : i32, i32, i32
  }
}

</mosaic_0001>

<bundles_post_ra>
// kernel: tpu_custom_call.1
= control target key start
LH: loop header
LB: loop body
LE: loop exit
PB: predicated region body
PF: predicated region fallthrough
CT: control target
= control target key end

     0   :  { %7 = vsyncpa [#allocation7], 0  ;;  %s689_s0 = inlined_call_operand.hbm [shape: f32[2,24,128], index: 0, kind: input, shape index: {}]   ;;  %s690_s1 = inlined_call_operand.hbm [shape: bf16[4,16,128], index: 1, kind: input, shape index: {}]   ;;  %s691_s2 = inlined_call_operand.hbm [shape: f32[1,1,128], index: 2, kind: output, shape index: {}]  }
   0x1   :  { %8 = vsyncpa [#allocation8], 0  ;;  %s529_s9 = smov [#allocation6]   ;;  %s420_s13 = scalar_lea.hbm %s690_s1, 512 }
   0x2   :  { %s14_s10 = sshll.u32 %s529_s9, 4  ;;  %p421_p0 = scmp.ne.s32.totalorder %s690_s1, %s420_s13  ;;  %s15_s10 = int_to_ptr.vmem [resolvable:$true] %s14_s10 }
   0x3   :  { %p424_p1 = scmp.lt.u32.totalorder %s420_s13, %s690_s1 }
   0x5   :  { %p426_p2 = pnand %p424_p1, %p421_p0 }
   0x7   :  { %429 = shalt.err (!%p426_p2)
}
   0x8   :  { %s430_s18 = scalar_lea.vmem %s15_s10, 512  ;;  %p435_p4 = scmp.lt.s32.totalorder %s15_s10, %s15_s10 }
   0x9   :  { %p431_p3 = scmp.ne.s32.totalorder %s15_s10, %s430_s18  ;;  %p436_p5 = scmp.lt.s32.totalorder %s430_s18, %s430_s18 }
   0xb   :  { %p437_p6 = por %p436_p5, %p435_p4 }
   0xd   :  { %p438_p7 = pnand %p437_p6, %p431_p3 }
   0xf   :  { %441 = shalt.err (!%p438_p7)
}
  0x10   :  { %s530_s19 = smov 64   ;;  %s531_s20 = smov 4  }
  0x11   :  { %20 = dma.hbm_to_vmem [thread:$0]  %s690_s1, 512, %s15_s10, [#allocation7], %s530_s19, %s530_s19, %s531_s20  }
  0x12   :  { %519 = dma.done.wait [#allocation7], 512  }
  0x13   :  { %520 = vsyncadd [#allocation7], 4294966784  ;;  %s532_s23 = smov [#allocation2]   ;;  %v533_v0 = vmov 0.0   ;;  %s442_s27 = scalar_lea.hbm %s689_s0, 384 }
  0x14   :  { %s34_s24 = sshll.u32 %s532_s23, 4  ;;  %63 = vst [vmem:[#allocation5] sm:$0xff] %v533_v0  ;;  %64 = vst [vmem:[#allocation5 + $0x8] sm:$0xff] %v533_v0  ;;  %p443_p8 = scmp.ne.s32.totalorder %s689_s0, %s442_s27  ;;  %s566_s24 = int_to_ptr.vmem [resolvable:$true] %s34_s24 }
  0x15   :  { %s444_s1 = scalar_lea.hbm %s689_s0, 768  ;;  %p446_p10 = scmp.lt.u32.totalorder %s442_s27, %s689_s0 }
  0x16   :  { %p445_p9 = scmp.lt.u32.totalorder %s444_s1, %s442_s27 }
  0x18   :  { %p447_p11 = por %p446_p10, %p445_p9 }
  0x1a   :  { %p448_p12 = pnand %p447_p11, %p443_p8 }
  0x1c   :  { %451 = shalt.err (!%p448_p12)  }
  0x1d   :  { %s452_s8 = scalar_lea.vmem %s566_s24, 384  ;;  %s456_s9 = scalar_lea.vmem %s566_s24, 768 }
  0x1e   :  { %p453_p13 = scmp.ne.s32.totalorder %s566_s24, %s452_s8  ;;  %p457_p0 = scmp.lt.s32.totalorder %s566_s24, %s566_s24 }
  0x1f   :  { %p458_p1 = scmp.lt.s32.totalorder %s456_s9, %s452_s8 }
  0x21   :  { %p459_p2 = por %p458_p1, %p457_p0 }
  0x23   :  { %p460_p3 = pnand %p459_p2, %p453_p13 }
  0x25   :  { %463 = shalt.err (!%p460_p3)  }
  0x26   :  { %37 = dma.hbm_to_vmem [thread:$0]  %s689_s0, 384, %s566_s24, [#allocation3]  ;;  %v344_v1 = vld [vmem:[#allocation6] sm:$0xff]   ;;  %v348_v2 = vld [vmem:[#allocation6 + $0x8] sm:$0xff]   ;;  %v352_v3 = vld [vmem:[#allocation6 + $0x10] sm:$0xff]  }
  0x27   :  { %v345_v4 = vunpack.c.l.bf16 %v344_v1  ;;  %v346_v5 = vunpack.c.h.bf16 %v344_v1  ;;  %v349_v6 = vunpack.c.l.bf16 %v348_v2  ;;  %v350_v7 = vunpack.c.h.bf16 %v348_v2  ;;  %v356_v8 = vld [vmem:[#allocation6 + $0x18] sm:$0xff]   ;;  %s599_s12 = smov 0  }
  0x28   :  { %v353_v9 = vunpack.c.l.bf16 %v352_v3  ;;  %v354_v10 = vunpack.c.h.bf16 %v352_v3  ;;  %v357_v13 = vunpack.c.l.bf16 %v356_v8  ;;  %v358_v14 = vunpack.c.h.bf16 %v356_v8 }
  0x29   :  { %v47_v11 = vadd.f32 %v349_v6, %v345_v4  ;;  %v48_v12 = vadd.f32 %v350_v7, %v346_v5 }
  0x2b   :  { %v54_v15 = vadd.f32 %v353_v9, %v47_v11  ;;  %v55_v16 = vadd.f32 %v354_v10, %v48_v12 }
  0x2d   :  { %v595_v17 = vadd.f32 %v357_v13, %v54_v15  ;;  %v597_v18 = vadd.f32 %v358_v14, %v55_v16 }
  0x2e LB: > { %s71_s13 = sand.u32 1, %s527_s12  ;;  %s527_s12 = sphi %s599_s12, %s692_s12  }
  0x2f   : > { %s72_s14 = smul.u32 24, %s71_s13  ;;  %s74_s16 = scalar_lea.sflag [#allocation3], %s71_s13 }
  0x31   : > { %s602_s15 = scalar_lea.vmem [#allocation2], %s72_s14 }
  0x32   : > { %521 = dma.done.wait %s74_s16, 384 }
  0x33   : > { %522 = vsyncadd %s74_s16, 4294966912  ;;  %s604_s17 = sadd.s32 1, %s527_s12   ;;  %s83_s18 = ssub.s32 1, %s71_s13 }
  0x34   : > { %s340_s19 = smul.u32 384, %s527_s12  ;;  %p379_p5 = scmp.lt.s32.totalorder %s604_s17, 2 }
  0x35   : > { %s88_s20 = smul.u32 24, %s83_s18  ;;  %s90_s28 = scalar_lea.sflag [#allocation3], %s83_s18 }
  0x36   : > { %s329_s23 = scalar_lea.hbm %s689_s0, %s340_s19 }
  0x37   : > { %s330_s25 = scalar_lea.hbm %s329_s23, 384  ;;  %s89_s26 = scalar_lea.vmem [#allocation2], %s88_s20 }
  0x38   : > { %s98_s27 = sshll.u32 %s89_s26, 4  ;;  %s492_s29 = scalar_lea.hbm %s329_s23, 768  ;;  %s99_s27 = int_to_ptr.vmem [resolvable:$true] %s98_s27 }
  0x39   : > { %p465_p6 = scmp.ne.s32.totalorder %s330_s25, %s492_s29  ;;  %p469_p9 = scmp.lt.u32.totalorder %s330_s25, %s689_s0 }
  0x3a   : > { %p470_p10 = scmp.lt.u32.totalorder %s444_s1, %s492_s29  ;;  %p472_p12 = scmp.lt.u32.totalorder %s492_s29, %s330_s25 }
  0x3b   : > { %p466_p7 = pnand %p465_p6, %p379_p5 }
  0x3c   : > { %p471_p11 = por %p470_p10, %p469_p9 }
  0x3d   : > { %p467_p8 = pneg %p466_p7 }
  0x3e   : > { %p473_p13 = por %p472_p12, %p471_p11 }
  0x40   : > { %p474_p0 = pnand %p473_p13, %p467_p8 }
  0x42   : > { %477 = shalt.err (!%p474_p0)  }
  0x43   : > { %s478_s6 = scalar_lea.vmem %s99_s27, 384  ;;  %p485_p6 = scmp.lt.s32.totalorder %s99_s27, %s566_s24 }
  0x44   : > { %p479_p1 = scmp.ne.s32.totalorder %s99_s27, %s478_s6  ;;  %p486_p7 = scmp.lt.s32.totalorder %s456_s9, %s478_s6 }
  0x46   : > { %p480_p2 = pnand %p479_p1, %p379_p5  ;;  %p487_p4 = por %p486_p7, %p485_p6 }
  0x48   : > { %p481_p3 = pneg %p480_p2 }
  0x4a   : > { %p488_p9 = pnand %p487_p4, %p481_p3 }
  0x4c   : > { %491 = shalt.err (!%p488_p9)  }
  0x4d   : > { %378 = dma.hbm_to_vmem [thread:$0]  (%p379_p5), %s330_s25, 384, %s99_s27, %s90_s28  ;;  %vm120_vm0 = vcmask 1045504   ;;  %v360_v15 = vld [vmem:[#allocation6] sm:$0xff]   ;;  %v364_v16 = vld [vmem:[#allocation6 + $0x8] sm:$0xff]  }
  0x4e   : > { %v102_v19 = vld [vmem:[%s602_s15] sm:$0xff]  ;;  %v103_v20 = vld [vmem:[%s602_s15 + $0x8] sm:$0xff]  ;;  %v104_v21 = vld [vmem:[%s602_s15 + $0x10] sm:$0xff]  ;;  %s534_s7 = smov 1   ;;  %s535_s8 = smov 127  }
  0x4f   : > { %v105_v22 = vmul.f32 10.0, %v102_v19  ;;  %v106_v23 = vmul.f32 10.0, %v103_v20  ;;  %v107_v24 = vmul.f32 10.0, %v104_v21  ;;  %s536_s10 = smov 126   ;;  %s537_s11 = smov 2  }
  0x50   : > { %s692_s12 = smov %s604_s17  ;;  %p693_p4 = scmp.ge.s32.totalorder %s604_s17, 2 }
  0x51   : > { %v108_v25 = vmul.f32 1.442695, %v105_v22  ;;  %v110_v26 = vmul.f32 1.442695, %v106_v23  ;;  %v112_v27 = vmul.f32 1.442695, %v107_v24 }
  0x52   : > { %v122_v33 = vrot.slane %v106_v23, 2  ;;  %v124_v34 = vrot.slane %v107_v24, 2  ;;  %v121_v50 = vrot.slane %v105_v22, 2  ;;  %v362_v23 = vunpack.c.h.bf16 %v360_v15  ;;  %s538_s12 = smov (%p693_p4), [#allocation9]  }
  0x53   : > { %398 = vpow2.f32 %v108_v25  ;;  %v361_v24 = vunpack.c.l.bf16 %v360_v15  ;;  %v366_v25 = vunpack.c.h.bf16 %v364_v16  ;;  %s302_s13 = sshll.u32 (%p693_p4), %s538_s12, 4  ;;  %s303_s13 = int_to_ptr.vmem [resolvable:$true] %s302_s13 }
  0x54   : > { %400 = vpow2.f32 %v110_v26  ;;  %v639_v39 = vsel %vm120_vm0, %v122_v33, %v124_v34  ;;  %v654_v51 = vsel %vm120_vm0, %v121_v50, %v122_v33  ;;  %s493_s15 = scalar_lea.vmem (%p693_p4), %s303_s13, 16  ;;  %s497_s0 = scalar_lea.vmem (%p693_p4), %s303_s13, 32 }
  0x55   : > { %402 = vpow2.f32 %v112_v27  ;;  %v129_v33 = vmul.f32 %v639_v39, %v597_v18  ;;  %p494_p5 = scmp.ne.s32.totalorder (%p693_p4), %s303_s13, %s493_s15  ;;  %p498_p8 = scmp.lt.s32.totalorder (%p693_p4), %s303_s13, %s303_s13 }
  0x56   :  { %p499_p10 = scmp.lt.s32.totalorder (%p693_p4), %s497_s0, %s493_s15 }
  0x58   :  { %p500_p11 = por (%p693_p4), %p499_p10, %p498_p8 }
  0x5a   :  { %p501_p12 = pnand (%p693_p4), %p500_p11, %p494_p5 }
  0x5d   : > { %v399_v28 = vpop.eup %398 }
  0x5e   : > { %v401_v29 = vpop.eup %400  ;;  %114 = vst [vmem:[#allocation4] sm:$0xff] %v399_v28 }
  0x5f   : > { %v403_v30 = vpop.eup %402  ;;  %115 = vst [vmem:[#allocation4 + $0x8] sm:$0xff] %v401_v29 }
  0x60   : > { %116 = vst [vmem:[#allocation4 + $0x10] sm:$0xff] %v403_v30  ;;  %v365_v30 = vunpack.c.l.bf16 %v364_v16 }
  0x66   : > { %v630_v31 = vld [vmem:[#allocation4 + $0x2] sm:$0xff] }
  0x67   : > { %v172_v32 = vld [vmem:[#allocation4 + $0x1] sm:$0xff]  ;;  %138 = vrot.lane.b32.xlu1 %v630_v31, %s534_s7  ;;  %132 = vrot.lane.b32.xlu0 %v630_v31, %s535_s8  ;;  %v173_v35 = vld [vmem:[#allocation4 + $0x9] sm:$0xff] }
  0x68   : > { %v174_v36 = vadd.f32 %v399_v28, %v172_v32  ;;  %v636_v37 = vld [vmem:[#allocation4 + $0xa] sm:$0xff]  ;;  %v175_v38 = vadd.f32 %v401_v29, %v173_v35 }
  0x69   : > { %v178_v41 = vld [vmem:[#allocation4 + $0x3] sm:$0xff]  ;;  %v179_v43 = vld [vmem:[#allocation4 + $0xb] sm:$0xff] }
  0x6a   : > { %v176_v40 = vadd.f32 %v174_v36, %v630_v31  ;;  %v177_v42 = vadd.f32 %v175_v38, %v636_v37  ;;  %v182_v45 = vld [vmem:[#allocation4 + $0x4] sm:$0xff]  ;;  %v183_v47 = vld [vmem:[#allocation4 + $0xc] sm:$0xff]  ;;  %v128_v38 = vmul.f32 %v654_v51, %v595_v17 }
  0x6b   : > { %140 = vrot.lane.b32.xlu1 %v636_v37, %s534_s7  ;;  %134 = vrot.lane.b32.xlu0 %v636_v37, %s535_s8 }
  0x6c   : > { %v180_v44 = vadd.f32 %v178_v41, %v176_v40  ;;  %v181_v46 = vadd.f32 %v179_v43, %v177_v42 }
  0x6e   : > { %v184_v48 = vadd.f32 %v182_v45, %v180_v44  ;;  %v185_v49 = vadd.f32 %v183_v47, %v181_v46 }
  0x6f   : > { %146 = vrot.lane.b32.xlu1 %v636_v37, %s536_s10  ;;  %144 = vrot.lane.b32.xlu0 %v630_v31, %s536_s10 }
  0x70   : > { %v191_v63 = vadd.f32 1e-06, %v185_v49  ;;  %v190_v1 = vadd.f32 1e-06, %v184_v48 }
  0x72   : > { %404 = vlog2.f32 %v191_v63 }
  0x73   : > { %202 = vrot.lane.b32.xlu1 %v179_v43, %s534_s7  ;;  %200 = vrot.lane.b32.xlu0 %v178_v41, %s534_s7  ;;  %406 = vlog2.f32 %v190_v1 }
  0x77   : > { %152 = vrot.lane.b32.xlu1 %v636_v37, %s537_s11  ;;  %150 = vrot.lane.b32.xlu0 %v630_v31, %s537_s11 }
  0x7b   : > { %208 = vrot.lane.b32.xlu1 %v173_v35, %s535_s8  ;;  %206 = vrot.lane.b32.xlu0 %v172_v32, %s535_s8 }
  0x7c   : > { %v405_v14 = vpop.eup %404 }
  0x7d   : > { %v407_v19 = vpop.eup %406  ;;  %v195_v22 = vmul.f32 0.6931472, %v405_v14 }
  0x7e   : > { %v193_v27 = vmul.f32 0.6931472, %v407_v19 }
  0x7f   : > { %240 = vrot.lane.b32.xlu1 %v179_v43, %s535_s8  ;;  %238 = vrot.lane.b32.xlu0 %v178_v41, %s535_s8  ;;  %v197_v44 = vmul.f32 %v366_v25, %v195_v22 }
  0x80   : > { %v196_v48 = vmul.f32 %v365_v30, %v193_v27  ;;  %v277_v27 = vld [vmem:[#allocation5 + $0x8] sm:$0xff]  ;;  %v276_v30 = vld [vmem:[#allocation5] sm:$0xff] }
  0x83   : > { %214 = vrot.lane.b32.xlu1 %v183_v47, %s537_s11  ;;  %212 = vrot.lane.b32.xlu0 %v182_v45, %s537_s11 }
  0x87   : > { %246 = vrot.lane.b32.xlu1 %v173_v35, %s534_s7  ;;  %244 = vrot.lane.b32.xlu0 %v172_v32, %s534_s7 }
  0x8b   : > { %220 = vrot.lane.b32.xlu1 %v401_v29, %s536_s10  ;;  %218 = vrot.lane.b32.xlu0 %v399_v28, %s536_s10 }
  0x8f   : > { %252 = vrot.lane.b32.xlu1 %v183_v47, %s536_s10  ;;  %250 = vrot.lane.b32.xlu0 %v182_v45, %s536_s10 }
  0x93   : > { %258 = vrot.lane.b32.xlu1 %v401_v29, %s537_s11  ;;  %256 = vrot.lane.b32.xlu0 %v399_v28, %s537_s11 }
  0xd9   : > { %v139_v52 = vpop.permute.xlu1 %138  ;;  %v133_v53 = vpop.permute.xlu0 %132 }
  0xda   : > { %v136_v59 = vadd.f32 %v133_v53, %v630_v31 }
  0xdc   : > { %v142_v0 = vadd.f32 %v139_v52, %v136_v59 }
  0xdd   : > { %v141_v54 = vpop.permute.xlu1 %140  ;;  %v135_v55 = vpop.permute.xlu0 %134 }
  0xde   : > { %v137_v56 = vadd.f32 %v135_v55, %v636_v37 }
  0xe0   : > { %v143_v60 = vadd.f32 %v141_v54, %v137_v56 }
  0xe1   : > { %v147_v57 = vpop.permute.xlu1 %146  ;;  %v145_v58 = vpop.permute.xlu0 %144 }
  0xe2   : > { %v149_v2 = vadd.f32 %v147_v57, %v143_v60  ;;  %v148_v3 = vadd.f32 %v145_v58, %v142_v0 }
  0xe5   : > { %v203_v61 = vpop.permute.xlu1 %202  ;;  %v201_v62 = vpop.permute.xlu0 %200 }
  0xe6   : > { %v205_v28 = vadd.f32 %v203_v61, %v636_v37  ;;  %v204_v29 = vadd.f32 %v201_v62, %v630_v31 }
  0xe9   : > { %v153_v4 = vpop.permute.xlu1 %152  ;;  %v151_v5 = vpop.permute.xlu0 %150 }
  0xea   : > { %v155_v6 = vadd.f32 %v153_v4, %v149_v2  ;;  %v154_v7 = vadd.f32 %v151_v5, %v148_v3 }
  0xec   : > { %v161_v8 = vadd.f32 1e-06, %v155_v6  ;;  %v160_v9 = vadd.f32 1e-06, %v154_v7  ;;  %v368_v7 = vld [vmem:[#allocation6 + $0x10] sm:$0xff]  }
  0xed   : > { %v209_v10 = vpop.permute.xlu1 %208  ;;  %v207_v11 = vpop.permute.xlu0 %206 }
  0xee   : > { %408 = vlog2.f32 %v161_v8  ;;  %v211_v41 = vadd.f32 %v209_v10, %v205_v28  ;;  %v210_v42 = vadd.f32 %v207_v11, %v204_v29  ;;  %v369_v11 = vunpack.c.l.bf16 %v368_v7 }
  0xef   : > { %410 = vlog2.f32 %v160_v9  ;;  %v370_v9 = vunpack.c.h.bf16 %v368_v7 }
  0xf1   : > { %v241_v12 = vpop.permute.xlu1 %240  ;;  %v239_v13 = vpop.permute.xlu0 %238 }
  0xf2   : > { %v243_v55 = vadd.f32 %v241_v12, %v636_v37  ;;  %v242_v51 = vadd.f32 %v239_v13, %v630_v31  ;;  %v372_v13 = vld [vmem:[#allocation6 + $0x18] sm:$0xff]  }
  0xf3   : > { %v374_v15 = vunpack.c.h.bf16 %v372_v13 }
  0xf5   : > { %v215_v20 = vpop.permute.xlu1 %214  ;;  %v213_v21 = vpop.permute.xlu0 %212 }
  0xf6   : > { %v217_v46 = vadd.f32 %v215_v20, %v211_v41  ;;  %v216_v47 = vadd.f32 %v213_v21, %v210_v42  ;;  %v373_v20 = vunpack.c.l.bf16 %v372_v13 }
  0xf8   : > { %v409_v26 = vpop.eup %408 }
  0xf9   : > { %v411_v32 = vpop.eup %410  ;;  %v165_v34 = vmul.f32 0.6931472, %v409_v26  ;;  %v247_v35 = vpop.permute.xlu1 %246 }
  0xfa   : > { %v245_v36 = vpop.permute.xlu0 %244  ;;  %v163_v40 = vmul.f32 0.6931472, %v411_v32  ;;  %v249_v62 = vadd.f32 %v247_v35, %v243_v55 }
  0xfb   : > { %v167_v43 = vmul.f32 %v362_v23, %v165_v34  ;;  %v248_v63 = vadd.f32 %v245_v36, %v242_v51 }
  0xfc   : > { %v166_v45 = vmul.f32 %v361_v24, %v163_v40 }
  0xfd   : > { %v169_v49 = vsub.f32 %v129_v33, %v167_v43  ;;  %v221_v50 = vpop.permute.xlu1 %220 }
  0xfe   : > { %v219_v52 = vpop.permute.xlu0 %218  ;;  %v168_v53 = vsub.f32 %v128_v38, %v166_v45  ;;  %v223_v39 = vadd.f32 %v221_v50, %v217_v46 }
  0xff   : > { %v222_v54 = vadd.f32 %v219_v52, %v216_v47  ;;  %v199_v56 = vsub.f32 %v169_v49, %v197_v44 }
 0x100   : > { %v229_v57 = vadd.f32 1e-06, %v223_v39  ;;  %v198_v58 = vsub.f32 %v168_v53, %v196_v48 }
 0x101   : > { %v228_v59 = vadd.f32 1e-06, %v222_v54  ;;  %v253_v60 = vpop.permute.xlu1 %252 }
 0x102   : > { %v251_v61 = vpop.permute.xlu0 %250  ;;  %412 = vlog2.f32 %v229_v57  ;;  %v255_v0 = vadd.f32 %v253_v60, %v249_v62 }
 0x103   : > { %414 = vlog2.f32 %v228_v59  ;;  %v254_v1 = vadd.f32 %v251_v61, %v248_v63 }
 0x105   : > { %v259_v2 = vpop.permute.xlu1 %258 }
 0x106   : > { %v257_v3 = vpop.permute.xlu0 %256  ;;  %v261_v4 = vadd.f32 %v259_v2, %v255_v0 }
 0x107   : > { %v260_v5 = vadd.f32 %v257_v3, %v254_v1 }
 0x108   : > { %v267_v6 = vadd.f32 1e-06, %v261_v4 }
 0x109   : > { %v266_v37 = vadd.f32 1e-06, %v260_v5 }
 0x10a   : > { %416 = vlog2.f32 %v267_v6 }
 0x10b   : > { %418 = vlog2.f32 %v266_v37 }
 0x10c   : > { %v413_v31 = vpop.eup %412 }
 0x10d   : > { %v415_v8 = vpop.eup %414  ;;  %v233_v10 = vmul.f32 0.6931472, %v413_v31 }
 0x10e   : > { %v231_v12 = vmul.f32 0.6931472, %v415_v8 }
 0x10f   : > { %v235_v14 = vmul.f32 %v370_v9, %v233_v10 }
 0x110   : > { %v234_v19 = vmul.f32 %v369_v11, %v231_v12 }
 0x111   : > { %v237_v24 = vsub.f32 %v199_v56, %v235_v14 }
 0x112   : > { %v236_v26 = vsub.f32 %v198_v58, %v234_v19 }
 0x114   : > { %v417_v16 = vpop.eup %416 }
 0x115   : > { %v419_v21 = vpop.eup %418  ;;  %v271_v22 = vmul.f32 0.6931472, %v417_v16 }
 0x116   : > { %v269_v23 = vmul.f32 0.6931472, %v419_v21 }
 0x117   : > { %v273_v25 = vmul.f32 %v374_v15, %v271_v22 }
 0x118   : > { %v272_v28 = vmul.f32 %v373_v20, %v269_v23  ;;  %69 = sbr.rel (!%p693_p4) target bundleno = 46 (0x2e), region = 57 }
 0x119   : > { %v275_v29 = vsub.f32 %v237_v24, %v273_v25 }
 0x11a   : > { %v274_v32 = vsub.f32 %v236_v26, %v272_v28 }
 0x11b   : > { %v279_v33 = vadd.f32 %v277_v27, %v275_v29 }
 0x11c   : > { %v278_v34 = vadd.f32 %v276_v30, %v274_v32 }
 0x11d   : > { %281 = vst [vmem:[#allocation5 + $0x8] sm:$0xff] %v279_v33 }
 0x11e   : > { %280 = vst [vmem:[#allocation5] sm:$0xff] %v278_v34 }
 0x124   :  { %v283_v36 = vld [vmem:[#allocation5 + $0x8] sm:$0xff] }
 0x125   :  { %v282_v35 = vld [vmem:[#allocation5] sm:$0xff] }
 0x126   :  { %v284_v38 = vadd.f32 %v283_v36, %v282_v35 }
 0x128   :  { %285 = vadd.xlane.f32.xlu0 %v284_v38 }
 0x1b5   :  { %v286_v40 = vpop.xlane.xlu0 %285 }
 0x1b6   :  { %v287_v41 = vrot.slane %v286_v40, 4 }
 0x1b8   :  { %v288_v42 = vadd.f32 %v287_v41, %v286_v40 }
 0x1ba   :  { %v289_v43 = vrot.slane %v288_v42, 2 }
 0x1bc   :  { %v290_v44 = vadd.f32 %v289_v43, %v288_v42 }
 0x1be   :  { %v291_v45 = vrot.slane %v290_v44, 1 }
 0x1c0   :  { %v292_v46 = vadd.f32 %v291_v45, %v290_v44 }
 0x1c2   :  { %375 = vpush %v292_v46 }
 0x1f3   :  { %s376_s14 = spop %375 }
 0x1f4   :  { %v294_v47 = vstv %s376_s14 }
 0x1f5   :  { %295 = vst [vmem:[#allocation9] sm:$0x1] %v294_v47 }
 0x1f6   :  { %504 = shalt.err (!%p501_p12)
}
 0x1f7   :  { %s505_s9 = scalar_lea.hbm %s691_s2, 16 }
 0x1f8   :  { %p506_p13 = scmp.ne.s32.totalorder %s691_s2, %s505_s9  ;;  %p509_p0 = scmp.lt.u32.totalorder %s505_s9, %s691_s2 }
 0x1fa   :  { %p511_p1 = pnand %p509_p0, %p506_p13 }
 0x1fc   :  { %514 = shalt.err (!%p511_p1)
}
 0x1fd   :  { %305 = dma.vmem_to_hbm [thread:$0]  %s303_s13, 16, %s691_s2, [#allocation8]  }
 0x1fe   :  { %523 = dma.done.wait [#allocation8], 16  }
 0x1ff   :  { %524 = vsyncadd [#allocation8], 4294967280 }
 0x200   :  { %309 = vsyncpa [#allocation7], 1 }
 0x201   :  { %310 = vsyncpa [#allocation8], 1 }
 0x202   :  { %311 = vsyncmov [#allocation3] }
 0x205   :  { %s312_s22 = vpop.sfrf %311 }
 0x206   :  { %p341_p2 = scmp.ne.s32.totalorder %s312_s22, 0 }
 0x208   :  { %316 = shalt.err (%p341_p2)  }
 0x209   :  { %318 = vsyncmov [#allocation3 + $0x1] }
 0x20c   :  { %s319_s23 = vpop.sfrf %318 }
 0x20d   :  { %p342_p3 = scmp.ne.s32.totalorder %s319_s23, 0 }
 0x20f   :  { %323 = shalt.err (%p342_p3)  }

</bundles_post_ra>
